<compile_context>
chip_gen: v7x
topology: tpu7x:2x2x1
jax: 0.10.0
libtpu: 0.0.40
codegen_flags: <defaults>
</compile_context>

<pallas_src>
import jax
import jax.numpy as jnp
from jax import lax
from jax.experimental import pallas as pl
from jax.experimental.pallas import tpu as pltpu

S = 8            # rows per stream (matches torch.randn(8, 512))
D_IN = 512       # Linear in_features (fixed by the module)
DIM = 128        # `dim` passed to Model.__init__ (lane-dense, multiple of 128)
SCALE = 1.0 / (512.0 ** 0.25)   # qk.div(512 ** 0.25)


def _attention_kernel(x_ref, w_ref, b_ref, o_ref):
    # Fused QKV projection: one MXU matmul [3S, 512] x [512, 3*DIM], f32 accumulate.
    # The 512**-0.25 scale is already folded into the q weight columns / bias.
    h = jnp.dot(x_ref[...], w_ref[...],
                preferred_element_type=jnp.float32) + b_ref[...]

    # Diagonal blocks are the projections we actually need
    # (rows 0:S are query_input, S:2S key_input, 2S:3S value_input; the fused
    #  weight columns are [wq | wk | wv]).  Slices are (8,128)-tile aligned.
    q = h[0:S,         0:DIM]          # already scaled by 512**-0.25
    k = h[S:2 * S,     DIM:2 * DIM]
    v = h[2 * S:3 * S, 2 * DIM:3 * DIM]

    # scores = q @ k.T without materializing a transpose: contract last axes.
    scores = lax.dot_general(q, k, (((1,), (1,)), ((), ())),
                             preferred_element_type=jnp.float32)

    # Numerically stable softmax along the last axis (exact division: the
    # [8,1] reciprocal is nanoseconds either way, so don't spend tolerance).
    m = jnp.max(scores, axis=-1, keepdims=True)
    p = jnp.exp(scores - m)
    p = p / jnp.sum(p, axis=-1, keepdims=True)

    # TODO(synk): nn.Dropout is treated as identity (eval-mode semantics);
    # training-mode dropout randomness cannot match PyTorch's RNG anyway.

    # output = softmax_qk @ value
    o_ref[...] = jnp.dot(p, v, preferred_element_type=jnp.float32).astype(o_ref.dtype)


def fuse_params(wq, bq, wk, bk, wv, bv):
    """One-time (init) parameter fusion.

    Folds the 512**-0.25 scale into the query projection and packs
    [wq|wk|wv] / [bq|bk|bv] into single arrays, so the per-call path never
    re-reads/re-writes ~768 KiB of weights through a concat op.
    """
    w = jnp.concatenate([wq * SCALE, wk, wv], axis=1)   # [512, 3*DIM]
    b = jnp.concatenate([bq * SCALE, bk, bv], axis=1)   # [1, 3*DIM]
    return w, b


@jax.jit
def attention_model(query_input, key_input, value_input, w_fused, b_fused):
    """Runs the whole forward pass in a single Pallas kernel.

    query_input/key_input/value_input: [S, 512] f32
    w_fused: [512, 3*DIM] f32  (from fuse_params, scale folded into q columns)
    b_fused: [1, 3*DIM] f32
    returns: [S, DIM] f32
    """
    # Row-stack the three (small, 48 KiB total) activation streams so the QKV
    # projection is ONE wide MXU matmul inside the kernel.
    x = jnp.concatenate([query_input, key_input, value_input], axis=0)  # [3S, 512]

    vmem_spec = pl.BlockSpec(memory_space=pltpu.MemorySpace.VMEM)
    return pl.pallas_call(
        _attention_kernel,
        out_shape=jax.ShapeDtypeStruct((S, DIM), jnp.float32),
        in_specs=[vmem_spec, vmem_spec, vmem_spec],
        out_specs=vmem_spec,
    )(x, w_fused, b_fused)


def _reference(query_input, key_input, value_input, wq, bq, wk, bk, wv, bv):
    hp = lax.Precision.HIGHEST   # match the kernel's f32 accumulation
    q = jnp.dot(query_input, wq, precision=hp) + bq
    k = jnp.dot(key_input, wk, precision=hp) + bk
    v = jnp.dot(value_input, wv, precision=hp) + bv
    scores = jnp.dot(q, k.T, precision=hp) * SCALE
    p = jax.nn.softmax(scores, axis=-1)
    return jnp.dot(p, v, precision=hp)


if __name__ == "__main__":
    key = jax.random.PRNGKey(0)
    k_inputs, k_params = jax.random.split(key)

    kq, kk, kv = jax.random.split(k_inputs, 3)
    query_input = jax.random.normal(kq, (S, D_IN), dtype=jnp.float32)
    key_input = jax.random.normal(kk, (S, D_IN), dtype=jnp.float32)
    value_input = jax.random.normal(kv, (S, D_IN), dtype=jnp.float32)

    # Deterministic parameter init (nn.Linear-style uniform(-1/sqrt(in), 1/sqrt(in))).
    bound = 1.0 / (D_IN ** 0.5)
    pkeys = jax.random.split(k_params, 6)
    wq = jax.random.uniform(pkeys[0], (D_IN, DIM), jnp.float32, -bound, bound)
    bq = jax.random.uniform(pkeys[1], (1, DIM), jnp.float32, -bound, bound)
    wk = jax.random.uniform(pkeys[2], (D_IN, DIM), jnp.float32, -bound, bound)
    bk = jax.random.uniform(pkeys[3], (1, DIM), jnp.float32, -bound, bound)
    wv = jax.random.uniform(pkeys[4], (D_IN, DIM), jnp.float32, -bound, bound)
    bv = jax.random.uniform(pkeys[5], (1, DIM), jnp.float32, -bound, bound)

    # One-time parameter fusion (module-init time, NOT in the per-call path).
    w_fused, b_fused = fuse_params(wq, bq, wk, bk, wv, bv)
    w_fused, b_fused = jax.block_until_ready((w_fused, b_fused))

    out = attention_model(query_input, key_input, value_input, w_fused, b_fused)
    out = jax.block_until_ready(out)

    ref = _reference(query_input, key_input, value_input,
                     wq, bq, wk, bk, wv, bv)
    assert out.shape == (S, DIM)
    assert jnp.allclose(out, ref, atol=2e-3, rtol=2e-3), (
        f"max abs err = {jnp.max(jnp.abs(out - ref))}")

    print("KERNEL_OK")
</pallas_src>

<mosaic_0001>
module attributes {stable_mosaic.version = 11 : i64} {
  func.func @_attention_kernel(%arg0: memref<24x512xf32, #tpu.memory_space<vmem>>, %arg1: memref<512x384xf32, #tpu.memory_space<vmem>>, %arg2: memref<1x384xf32, #tpu.memory_space<vmem>>, %arg3: memref<8x128xf32, #tpu.memory_space<vmem>>) attributes {dimension_semantics = [], scalar_prefetch = 0 : i64, scratch_operands = 0 : i64, tpu.core_type = #tpu.core_type<tc>} {
    %c0 = arith.constant 0 : index
    %c0_0 = arith.constant 0 : index
    %0 = vector.load %arg0[%c0, %c0_0] : memref<24x512xf32, #tpu.memory_space<vmem>>, vector<24x512xf32>
    %c0_1 = arith.constant 0 : index
    %c0_2 = arith.constant 0 : index
    %1 = vector.load %arg1[%c0_1, %c0_2] : memref<512x384xf32, #tpu.memory_space<vmem>>, vector<512x384xf32>
    %cst = arith.constant dense<0.000000e+00> : vector<24x384xf32>
    %2 = tpu.matmul %0, %1, %cst {dimension_numbers = #tpu.dot_dimension_numbers<[1], [0], [0], [1], [0, 0, 1, 1], [], []>} : vector<24x512xf32>, vector<512x384xf32>, vector<24x384xf32> -> vector<24x384xf32>
    %c0_3 = arith.constant 0 : index
    %c0_4 = arith.constant 0 : index
    %3 = vector.load %arg2[%c0_3, %c0_4] : memref<1x384xf32, #tpu.memory_space<vmem>>, vector<1x384xf32>
    %4 = vector.broadcast %3 : vector<1x384xf32> to vector<24x384xf32>
    %5 = arith.addf %2, %4 : vector<24x384xf32>
    %6 = vector.extract_strided_slice %5 {offsets = [0, 0], sizes = [8, 128], strides = [1, 1]} : vector<24x384xf32> to vector<8x128xf32>
    %7 = vector.extract_strided_slice %5 {offsets = [8, 128], sizes = [8, 128], strides = [1, 1]} : vector<24x384xf32> to vector<8x128xf32>
    %8 = vector.extract_strided_slice %5 {offsets = [16, 256], sizes = [8, 128], strides = [1, 1]} : vector<24x384xf32> to vector<8x128xf32>
    %cst_5 = arith.constant dense<0.000000e+00> : vector<8x8xf32>
    %9 = tpu.matmul %6, %7, %cst_5 {dimension_numbers = #tpu.dot_dimension_numbers<[1], [1], [0], [0], [0, 0, 1, 0], [], []>} : vector<8x128xf32>, vector<8x128xf32>, vector<8x8xf32> -> vector<8x8xf32>
    %cst_6 = arith.constant dense<0xFF800000> : vector<8xf32>
    %10 = vector.multi_reduction <maximumf>, %9, %cst_6 [1] : vector<8x8xf32> to vector<8xf32>
    %11 = vector.shape_cast %10 : vector<8xf32> to vector<8x1xf32>
    %12 = vector.broadcast %11 : vector<8x1xf32> to vector<8x8xf32>
    %13 = arith.subf %9, %12 : vector<8x8xf32>
    %14 = math.exp %13 : vector<8x8xf32>
    %cst_7 = arith.constant dense<0.000000e+00> : vector<8xf32>
    %15 = vector.multi_reduction <add>, %14, %cst_7 [1] : vector<8x8xf32> to vector<8xf32>
    %16 = vector.shape_cast %15 : vector<8xf32> to vector<8x1xf32>
    %17 = vector.broadcast %16 : vector<8x1xf32> to vector<8x8xf32>
    %18 = arith.divf %14, %17 : vector<8x8xf32>
    %cst_8 = arith.constant dense<0.000000e+00> : vector<8x128xf32>
    %19 = tpu.matmul %18, %8, %cst_8 {dimension_numbers = #tpu.dot_dimension_numbers<[1], [0], [0], [1], [0, 0, 1, 1], [], []>} : vector<8x8xf32>, vector<8x128xf32>, vector<8x128xf32> -> vector<8x128xf32>
    %c0_9 = arith.constant 0 : index
    %c0_10 = arith.constant 0 : index
    %20 = vector.load %arg3[%c0_9, %c0_10] : memref<8x128xf32, #tpu.memory_space<vmem>>, vector<8x128xf32>
    tpu.vector_store %arg3[%c0_9, %c0_10], %19 {strides = array<i32>} : memref<8x128xf32, #tpu.memory_space<vmem>>, vector<8x128xf32>,
    return
  }
}

</mosaic_0001>

<bundles_post_ra>
// kernel: attention_model.1
= control target key start
LH: loop header
LB: loop body
LE: loop exit
PB: predicated region body
PF: predicated region fallthrough
CT: control target
= control target key end

     0   :  { %8 = vsyncpa [#allocation3], 0  ;;  %s1206_s0 = inlined_call_operand.vmem [shape: f32[24,512], index: 0, kind: input, shape index: {}]   ;;  %s1207_s1 = inlined_call_operand.hbm [shape: f32[512,384], index: 1, kind: input, shape index: {}]   ;;  %s1208_s2 = inlined_call_operand.vmem [shape: f32[1,384], index: 2, kind: input, shape index: {}]   ;;  %s1209_s3 = inlined_call_operand.hbm [shape: f32[8,128], index: 3, kind: output, shape index: {}]  }
   0x1   :  { %9 = vsyncpa [#allocation4], 0  ;;  %s1088_s12 = smov [#allocation2]   ;;  %s1040_s16 = scalar_lea.hbm %s1207_s1, 24576 }
   0x2   :  { %s17_s13 = sshll.u32 %s1088_s12, 4  ;;  %p1041_p0 = scmp.ne.s32.totalorder %s1207_s1, %s1040_s16  ;;  %s18_s13 = int_to_ptr.vmem [resolvable:$true] %s17_s13 }
   0x3   :  { %p1044_p1 = scmp.lt.u32.totalorder %s1040_s16, %s1207_s1 }
   0x5   :  { %p1046_p2 = pnand %p1044_p1, %p1041_p0 }
   0x7   :  { %1049 = shalt.err (!%p1046_p2)
}
   0x8   :  { %s1050_s21 = scalar_lea.vmem %s18_s13, 24576  ;;  %p1055_p4 = scmp.lt.s32.totalorder %s18_s13, %s18_s13 }
   0x9   :  { %p1051_p3 = scmp.ne.s32.totalorder %s18_s13, %s1050_s21  ;;  %p1056_p5 = scmp.lt.s32.totalorder %s1050_s21, %s1050_s21 }
   0xb   :  { %p1057_p6 = por %p1056_p5, %p1055_p4 }
   0xd   :  { %p1058_p7 = pnand %p1057_p6, %p1051_p3 }
   0xf   :  { %1061 = shalt.err (!%p1058_p7)
}
  0x10   :  { %s1089_s22 = smov 384   ;;  %s1090_s23 = smov 24  }
  0x11   :  { %23 = dma.hbm_to_vmem [thread:$0]  %s1207_s1, 24576, %s18_s13, [#allocation3], %s1089_s22, %s1089_s22, %s1090_s23  }
  0x12   :  { %1084 = dma.done.wait [#allocation3], 24576  }
  0x13   :  { %1085 = vsyncadd [#allocation3], 4294942720  ;;  %v42_v0 = vld [vmem:[#allocation2 + $0x8] sm:$0xff]  ;;  %v45_v1 = vld [vmem:[#allocation2 + $0x20] sm:$0xff]  ;;  %vm1092_vm0 = vmmov 0   ;;  %vm634_vm1 = vcmask 64512  }
  0x14   :  { %v41_v2 = vld [vmem:[#allocation2] sm:$0xff]  ;;  %v832_v3 = vpack.c.bf16 %v45_v1, %v42_v0  ;;  %v44_v4 = vld [vmem:[#allocation2 + $0x18] sm:$0xff]  ;;  %v51_v6 = vld [vmem:[#allocation2 + $0x50] sm:$0xff] }
  0x15   :  { %v48_v5 = vld [vmem:[#allocation2 + $0x38] sm:$0xff]  ;;  %v834_v7 = vpack.c.bf16 %v44_v4, %v41_v2  ;;  %v47_v9 = vld [vmem:[#allocation2 + $0x30] sm:$0xff]  ;;  %v50_v10 = vld [vmem:[#allocation2 + $0x48] sm:$0xff] }
  0x16   :  { %v836_v8 = vpack.c.bf16 %v51_v6, %v48_v5  ;;  %v54_v11 = vld [vmem:[#allocation2 + $0x68] sm:$0xff]  ;;  %833 = vmatprep.subr.bf16.mxu0 %v832_v3  ;;  %v57_v12 = vld [vmem:[#allocation2 + $0x80] sm:$0xff]  ;;  %v838_v13 = vpack.c.bf16 %v50_v10, %v47_v9  ;;  %v56_v16 = vld [vmem:[#allocation2 + $0x78] sm:$0xff] }
  0x17   :  { %835 = vmatpush1.bf16.msra.mxu0 %v834_v7  ;;  %v840_v14 = vpack.c.bf16 %v57_v12, %v54_v11  ;;  %v53_v15 = vld [vmem:[#allocation2 + $0x60] sm:$0xff]  ;;  %v60_v17 = vld [vmem:[#allocation2 + $0x98] sm:$0xff]  ;;  %v63_v18 = vld [vmem:[#allocation2 + $0xb0] sm:$0xff] }
  0x18   :  { %837 = vmatprep.subr.bf16.mxu0 %v836_v8  ;;  %v842_v19 = vpack.c.bf16 %v56_v16, %v53_v15  ;;  %v844_v20 = vpack.c.bf16 %v63_v18, %v60_v17  ;;  %v59_v21 = vld [vmem:[#allocation2 + $0x90] sm:$0xff]  ;;  %v62_v22 = vld [vmem:[#allocation2 + $0xa8] sm:$0xff]  ;;  %v69_v24 = vld [vmem:[#allocation2 + $0xe0] sm:$0xff] }
  0x19   :  { %v66_v23 = vld [vmem:[#allocation2 + $0xc8] sm:$0xff]  ;;  %v846_v25 = vpack.c.bf16 %v62_v22, %v59_v21  ;;  %v65_v27 = vld [vmem:[#allocation2 + $0xc0] sm:$0xff]  ;;  %v68_v28 = vld [vmem:[#allocation2 + $0xd8] sm:$0xff] }
  0x1a   :  { %v848_v26 = vpack.c.bf16 %v69_v24, %v66_v23  ;;  %v72_v29 = vld [vmem:[#allocation2 + $0xf8] sm:$0xff]  ;;  %v75_v30 = vld [vmem:[#allocation2 + $0x110] sm:$0xff]  ;;  %v850_v31 = vpack.c.bf16 %v68_v28, %v65_v27  ;;  %v74_v34 = vld [vmem:[#allocation2 + $0x108] sm:$0xff] }
  0x1b   :  { %839 = vmatpush1.bf16.msra.mxu0 %v838_v13  ;;  %v852_v32 = vpack.c.bf16 %v75_v30, %v72_v29  ;;  %v71_v33 = vld [vmem:[#allocation2 + $0xf0] sm:$0xff]  ;;  %v78_v35 = vld [vmem:[#allocation2 + $0x128] sm:$0xff]  ;;  %v81_v36 = vld [vmem:[#allocation2 + $0x140] sm:$0xff] }
  0x1c   :  { %841 = vmatprep.subr.bf16.mxu0 %v840_v14  ;;  %v854_v37 = vpack.c.bf16 %v74_v34, %v71_v33  ;;  %v856_v38 = vpack.c.bf16 %v81_v36, %v78_v35  ;;  %v77_v39 = vld [vmem:[#allocation2 + $0x120] sm:$0xff]  ;;  %v80_v40 = vld [vmem:[#allocation2 + $0x138] sm:$0xff]  ;;  %v30_v41 = vld [vmem:[%s1206_s0 + $0x8] sm:$0xff] }
  0x1d   :  { %v84_v42 = vld [vmem:[#allocation2 + $0x158] sm:$0xff]  ;;  %v87_v43 = vld [vmem:[#allocation2 + $0x170] sm:$0xff]  ;;  %314 = vmatprep.mubr.f32.mxu0 %v30_v41  ;;  %472 = vmatprep.mubr.f32.mxu1 %v30_v41  ;;  %v858_v44 = vpack.c.bf16 %v80_v40, %v77_v39  ;;  %v86_v47 = vld [vmem:[#allocation2 + $0x168] sm:$0xff] }
  0x1e   :  { %v860_v45 = vpack.c.bf16 %v87_v43, %v84_v42  ;;  %v83_v46 = vld [vmem:[#allocation2 + $0x150] sm:$0xff]  ;;  %v90_v48 = vld [vmem:[#allocation2 + $0x188] sm:$0xff]  ;;  %v93_v49 = vld [vmem:[#allocation2 + $0x1a0] sm:$0xff] }
  0x1f   :  { %843 = vmatpush1.bf16.msra.mxu0 %v842_v19  ;;  %v862_v50 = vpack.c.bf16 %v86_v47, %v83_v46  ;;  %v864_v51 = vpack.c.bf16 %v93_v49, %v90_v48  ;;  %v89_v52 = vld [vmem:[#allocation2 + $0x180] sm:$0xff]  ;;  %v92_v53 = vld [vmem:[#allocation2 + $0x198] sm:$0xff]  ;;  %v99_v55 = vld [vmem:[#allocation2 + $0x1d0] sm:$0xff] }
  0x20   :  { %845 = vmatprep.subr.bf16.mxu0 %v844_v20  ;;  %v96_v54 = vld [vmem:[#allocation2 + $0x1b8] sm:$0xff]  ;;  %v866_v56 = vpack.c.bf16 %v92_v53, %v89_v52  ;;  %v95_v58 = vld [vmem:[#allocation2 + $0x1b0] sm:$0xff]  ;;  %v98_v59 = vld [vmem:[#allocation2 + $0x1c8] sm:$0xff] }
  0x21   :  { %v868_v57 = vpack.c.bf16 %v99_v55, %v96_v54  ;;  %v102_v60 = vld [vmem:[#allocation2 + $0x1e8] sm:$0xff]  ;;  %v105_v61 = vld [vmem:[#allocation2 + $0x200] sm:$0xff]  ;;  %v870_v62 = vpack.c.bf16 %v98_v59, %v95_v58  ;;  %v104_v1 = vld [vmem:[#allocation2 + $0x1f8] sm:$0xff] }
  0x22   :  { %v872_v63 = vpack.c.bf16 %v105_v61, %v102_v60  ;;  %v101_v0 = vld [vmem:[#allocation2 + $0x1e0] sm:$0xff]  ;;  %v108_v2 = vld [vmem:[#allocation2 + $0x218] sm:$0xff]  ;;  %v111_v3 = vld [vmem:[#allocation2 + $0x230] sm:$0xff] }
  0x23   :  { %847 = vmatpush1.bf16.msra.mxu0 %v846_v25  ;;  %v874_v4 = vpack.c.bf16 %v104_v1, %v101_v0  ;;  %v876_v5 = vpack.c.bf16 %v111_v3, %v108_v2  ;;  %v107_v6 = vld [vmem:[#allocation2 + $0x210] sm:$0xff]  ;;  %v110_v7 = vld [vmem:[#allocation2 + $0x228] sm:$0xff]  ;;  %v117_v9 = vld [vmem:[#allocation2 + $0x260] sm:$0xff] }
  0x24   :  { %849 = vmatprep.subr.bf16.mxu0 %v848_v26  ;;  %v114_v8 = vld [vmem:[#allocation2 + $0x248] sm:$0xff]  ;;  %v878_v10 = vpack.c.bf16 %v110_v7, %v107_v6  ;;  %v113_v11 = vld [vmem:[#allocation2 + $0x240] sm:$0xff]  ;;  %v116_v13 = vld [vmem:[#allocation2 + $0x258] sm:$0xff] }
  0x25   :  { %v880_v12 = vpack.c.bf16 %v117_v9, %v114_v8  ;;  %v120_v14 = vld [vmem:[#allocation2 + $0x278] sm:$0xff]  ;;  %v123_v15 = vld [vmem:[#allocation2 + $0x290] sm:$0xff]  ;;  %v94_v17 = vld [vmem:[#allocation2 + $0x1a8] sm:$0xff]  ;;  %v882_v23 = vpack.c.bf16 %v116_v13, %v113_v11 }
  0x26   :  { %v91_v16 = vld [vmem:[#allocation2 + $0x190] sm:$0xff]  ;;  %v46_v20 = vld [vmem:[#allocation2 + $0x28] sm:$0xff]  ;;  %v97_v21 = vld [vmem:[#allocation2 + $0x1c0] sm:$0xff]  ;;  %v884_v29 = vpack.c.bf16 %v123_v15, %v120_v14 }
  0x27   :  { %851 = vmatpush1.bf16.msra.mxu0 %v850_v31  ;;  %v43_v18 = vld [vmem:[#allocation2 + $0x10] sm:$0xff]  ;;  %v960_v19 = vpack.c.bf16 %v94_v17, %v91_v16  ;;  %v100_v22 = vld [vmem:[#allocation2 + $0x1d8] sm:$0xff]  ;;  %v49_v26 = vld [vmem:[#allocation2 + $0x40] sm:$0xff] }
  0x28   :  { %853 = vmatprep.subr.bf16.mxu0 %v852_v32  ;;  %v962_v24 = vpack.c.bf16 %v46_v20, %v43_v18  ;;  %v964_v25 = vpack.c.bf16 %v100_v22, %v97_v21  ;;  %v52_v27 = vld [vmem:[#allocation2 + $0x58] sm:$0xff]  ;;  %v103_v28 = vld [vmem:[#allocation2 + $0x1f0] sm:$0xff]  ;;  %v122_v31 = vld [vmem:[#allocation2 + $0x288] sm:$0xff] }
  0x29   :  { %v119_v30 = vld [vmem:[#allocation2 + $0x270] sm:$0xff]  ;;  %961 = vmatprep.subr.bf16.mxu1 %v960_v19  ;;  %v106_v32 = vld [vmem:[#allocation2 + $0x208] sm:$0xff]  ;;  %v129_v34 = vld [vmem:[#allocation2 + $0x2c0] sm:$0xff]  ;;  %v966_v35 = vpack.c.bf16 %v52_v27, %v49_v26 }
  0x2a   :  { %v126_v33 = vld [vmem:[#allocation2 + $0x2a8] sm:$0xff]  ;;  %963 = vmatpush3.bf16.msra.mxu1 %v962_v24  ;;  %v968_v36 = vpack.c.bf16 %v106_v32, %v103_v28  ;;  %v886_v39 = vpack.c.bf16 %v122_v31, %v119_v30  ;;  %v109_v40 = vld [vmem:[#allocation2 + $0x220] sm:$0xff]  ;;  %v112_v41 = vld [vmem:[#allocation2 + $0x238] sm:$0xff] }
  0x2b   :  { %855 = vmatpush1.bf16.msra.mxu0 %v854_v37  ;;  %965 = vmatprep.subr.bf16.mxu1 %v964_v25  ;;  %v55_v37 = vld [vmem:[#allocation2 + $0x70] sm:$0xff]  ;;  %v888_v42 = vpack.c.bf16 %v129_v34, %v126_v33  ;;  %v125_v43 = vld [vmem:[#allocation2 + $0x2a0] sm:$0xff]  ;;  %v972_v48 = vpack.c.bf16 %v112_v41, %v109_v40  ;;  %v118_v53 = vld [vmem:[#allocation2 + $0x268] sm:$0xff] }
  0x2c   :  { %857 = vmatprep.subr.bf16.mxu0 %v856_v38  ;;  %v58_v38 = vld [vmem:[#allocation2 + $0x88] sm:$0xff]  ;;  %v135_v46 = vld [vmem:[#allocation2 + $0x2f0] sm:$0xff]  ;;  %v61_v49 = vld [vmem:[#allocation2 + $0xa0] sm:$0xff] }
  0x2d   :  { %v970_v47 = vpack.c.bf16 %v58_v38, %v55_v37  ;;  %v115_v52 = vld [vmem:[#allocation2 + $0x250] sm:$0xff]  ;;  %v141_v58 = vld [vmem:[#allocation2 + $0x320] sm:$0xff]  ;;  %v124_v1 = vld [vmem:[#allocation2 + $0x298] sm:$0xff] }
  0x2e   :  { %967 = vmatpush3.bf16.msra.mxu1 %v966_v35  ;;  %v131_v55 = vld [vmem:[#allocation2 + $0x2d0] sm:$0xff]  ;;  %v976_v60 = vpack.c.bf16 %v118_v53, %v115_v52  ;;  %v121_v0 = vld [vmem:[#allocation2 + $0x280] sm:$0xff]  ;;  %v130_v14 = vld [vmem:[#allocation2 + $0x2c8] sm:$0xff] }
  0x2f   :  { %859 = vmatpush1.bf16.msra.mxu0 %v858_v44  ;;  %v128_v44 = vld [vmem:[#allocation2 + $0x2b8] sm:$0xff]  ;;  %969 = vmatprep.subr.bf16.mxu1 %v968_v36  ;;  %v67_v61 = vld [vmem:[#allocation2 + $0xd0] sm:$0xff]  ;;  %v137_v3 = vld [vmem:[#allocation2 + $0x300] sm:$0xff]  ;;  %v980_v8 = vpack.c.bf16 %v124_v1, %v121_v0 }
  0x30   :  { %861 = vmatprep.subr.bf16.mxu0 %v860_v45  ;;  %v132_v45 = vld [vmem:[#allocation2 + $0x2d8] sm:$0xff]  ;;  %v147_v6 = vld [vmem:[#allocation2 + $0x350] sm:$0xff]  ;;  %v73_v9 = vld [vmem:[#allocation2 + $0x100] sm:$0xff] }
  0x31   :  { %v892_v54 = vpack.c.bf16 %v135_v46, %v132_v45  ;;  %v1132_v11 = vld [vmem:[%s1206_s0] sm:$0xff]  ;;  %v127_v13 = vld [vmem:[#allocation2 + $0x2b0] sm:$0xff]  ;;  %v146_v17 = vld [vmem:[#allocation2 + $0x348] sm:$0xff] }
  0x32   :  { %971 = vmatpush3.bf16.msra.mxu1 %v970_v47  ;;  %v143_v16 = vld [vmem:[#allocation2 + $0x330] sm:$0xff]  ;;  %v1137_v18 = vld [vmem:[%s1206_s0 + $0x28] sm:$0xff]  ;;  %v153_v20 = vld [vmem:[#allocation2 + $0x380] sm:$0xff]  ;;  %v984_v22 = vpack.c.bf16 %v130_v14, %v127_v13 }
  0x33   :  { %863 = vmatpush1.bf16.msra.mxu0 %v862_v50  ;;  %v64_v50 = vld [vmem:[#allocation2 + $0xb8] sm:$0xff]  ;;  %973 = vmatprep.subr.bf16.mxu1 %v972_v48  ;;  %v150_v19 = vld [vmem:[#allocation2 + $0x368] sm:$0xff]  ;;  %v902_v25 = vpack.c.bf16 %v146_v17, %v143_v16  ;;  %v1144_v26 = vld [vmem:[%s1206_s0 + $0x20] sm:$0xff] }
  0x34   :  { %865 = vmatprep.subr.bf16.mxu0 %v864_v51  ;;  %v890_v51 = vpack.c.bf16 %v128_v44, %v125_v43  ;;  %v974_v59 = vpack.c.bf16 %v64_v50, %v61_v49  ;;  %v82_v24 = vld [vmem:[#allocation2 + $0x148] sm:$0xff]  ;;  %v133_v27 = vld [vmem:[#allocation2 + $0x2e0] sm:$0xff]  ;;  %v136_v28 = vld [vmem:[#allocation2 + $0x2f8] sm:$0xff] }
  0x35   :  { %v149_v30 = vld [vmem:[#allocation2 + $0x360] sm:$0xff]  ;;  %v152_v31 = vld [vmem:[#allocation2 + $0x378] sm:$0xff]  ;;  %v1149_v32 = vld [vmem:[%s1206_s0 + $0x48] sm:$0xff]  ;;  %v988_v36 = vpack.c.bf16 %v136_v28, %v133_v27 }
  0x36   :  { %975 = vmatpush3.bf16.msra.mxu1 %v974_v59  ;;  %v156_v33 = vld [vmem:[#allocation2 + $0x398] sm:$0xff]  ;;  %v159_v34 = vld [vmem:[#allocation2 + $0x3b0] sm:$0xff]  ;;  %v85_v37 = vld [vmem:[#allocation2 + $0x160] sm:$0xff] }
  0x37   :  { %867 = vmatpush1.bf16.msra.mxu0 %v866_v56  ;;  %v134_v56 = vld [vmem:[#allocation2 + $0x2e8] sm:$0xff]  ;;  %977 = vmatprep.subr.bf16.mxu1 %v976_v60  ;;  %v88_v38 = vld [vmem:[#allocation2 + $0x178] sm:$0xff]  ;;  %v1156_v40 = vld [vmem:[%s1206_s0 + $0x40] sm:$0xff]  ;;  %v908_v43 = vpack.c.bf16 %v159_v34, %v156_v33 }
  0x38   :  { %869 = vmatprep.subr.bf16.mxu0 %v868_v57  ;;  %v138_v57 = vld [vmem:[#allocation2 + $0x308] sm:$0xff]  ;;  %v187_v41 = vld [vmem:[#allocation2 + $0x490] sm:$0xff]  ;;  %v1161_v46 = vld [vmem:[%s1206_s0 + $0x18] sm:$0xff]  ;;  %v990_v49 = vpack.c.bf16 %v88_v38, %v85_v37 }
  0x39   :  { %v896_v2 = vpack.c.bf16 %v141_v58, %v138_v57  ;;  %v155_v44 = vld [vmem:[#allocation2 + $0x390] sm:$0xff]  ;;  %v158_v45 = vld [vmem:[#allocation2 + $0x3a8] sm:$0xff]  ;;  %v165_v48 = vld [vmem:[#allocation2 + $0x3e0] sm:$0xff] }
  0x3a   :  { %v162_v47 = vld [vmem:[#allocation2 + $0x3c8] sm:$0xff]  ;;  %v910_v53 = vpack.c.bf16 %v158_v45, %v155_v44  ;;  %v161_v57 = vld [vmem:[#allocation2 + $0x3c0] sm:$0xff]  ;;  %v164_v58 = vld [vmem:[#allocation2 + $0x3d8] sm:$0xff] }
  0x3b   :  { %871 = vmatpush1.bf16.msra.mxu0 %v870_v62  ;;  %v70_v62 = vld [vmem:[#allocation2 + $0xe8] sm:$0xff]  ;;  %v168_v59 = vld [vmem:[#allocation2 + $0x3f8] sm:$0xff]  ;;  %v171_v60 = vld [vmem:[#allocation2 + $0x410] sm:$0xff]  ;;  %v914_v1 = vpack.c.bf16 %v164_v58, %v161_v57 }
  0x3c   :  { %873 = vmatprep.subr.bf16.mxu0 %v872_v63  ;;  %v894_v63 = vpack.c.bf16 %v134_v56, %v131_v55  ;;  %v978_v7 = vpack.c.bf16 %v70_v62, %v67_v61  ;;  %v142_v52 = vld [vmem:[#allocation2 + $0x328] sm:$0xff]  ;;  %v196_v55 = vld [vmem:[#allocation2 + $0x4d8] sm:$0xff]  ;;  %v912_v56 = vpack.c.bf16 %v165_v48, %v162_v47  ;;  %v211_v27 = vld [vmem:[#allocation2 + $0x550] sm:$0xff] }
  0x3d   :  { %v148_v0 = vld [vmem:[#allocation2 + $0x358] sm:$0xff]  ;;  %v154_v13 = vld [vmem:[#allocation2 + $0x388] sm:$0xff]  ;;  %v189_v33 = vld [vmem:[#allocation2 + $0x4a0] sm:$0xff] }
  0x3e   :  { %979 = vmatpush3.bf16.msra.mxu1 %v978_v7  ;;  %v174_v7 = vld [vmem:[#allocation2 + $0x428] sm:$0xff]  ;;  %v208_v16 = vld [vmem:[#allocation2 + $0x538] sm:$0xff]  ;;  %v217_v38 = vld [vmem:[#allocation2 + $0x580] sm:$0xff] }
  0x3f   :  { %875 = vmatpush1.bf16.msra.mxu0 %v874_v4  ;;  %v140_v4 = vld [vmem:[#allocation2 + $0x318] sm:$0xff]  ;;  %981 = vmatprep.subr.bf16.mxu1 %v980_v8  ;;  %v177_v8 = vld [vmem:[#allocation2 + $0x440] sm:$0xff]  ;;  %v214_v28 = vld [vmem:[#allocation2 + $0x568] sm:$0xff] }
  0x40   :  { %877 = vmatprep.subr.bf16.mxu0 %v876_v5  ;;  %v144_v5 = vld [vmem:[#allocation2 + $0x338] sm:$0xff]  ;;  %v920_v17 = vpack.c.bf16 %v177_v8, %v174_v7  ;;  %v169_v48 = vld [vmem:[#allocation2 + $0x400] sm:$0xff] }
  0x41   :  { %v900_v15 = vpack.c.bf16 %v147_v6, %v144_v5  ;;  %v167_v5 = vld [vmem:[#allocation2 + $0x3f0] sm:$0xff]  ;;  %v170_v6 = vld [vmem:[#allocation2 + $0x408] sm:$0xff]  ;;  %v192_v44 = vld [vmem:[#allocation2 + $0x4b8] sm:$0xff] }
  0x42   :  { %v918_v14 = vpack.c.bf16 %v170_v6, %v167_v5  ;;  %v181_v7 = vld [vmem:[#allocation2 + $0x460] sm:$0xff]  ;;  %v184_v8 = vld [vmem:[#allocation2 + $0x478] sm:$0xff] }
  0x43   :  { %879 = vmatpush1.bf16.msra.mxu0 %v878_v10  ;;  %v76_v10 = vld [vmem:[#allocation2 + $0x118] sm:$0xff] }
  0x44   :  { %881 = vmatprep.subr.bf16.mxu0 %v880_v12  ;;  %v898_v12 = vpack.c.bf16 %v140_v4, %v137_v3  ;;  %v982_v21 = vpack.c.bf16 %v76_v10, %v73_v9  ;;  %v202_v3 = vld [vmem:[#allocation2 + $0x508] sm:$0xff]  ;;  %v916_v4 = vpack.c.bf16 %v171_v60, %v168_v59  ;;  %v175_v59 = vld [vmem:[#allocation2 + $0x430] sm:$0xff] }
  0x45   :  { %v178_v60 = vld [vmem:[#allocation2 + $0x448] sm:$0xff] }
  0x46   :  { %983 = vmatpush3.bf16.msra.mxu1 %v982_v21  ;;  %v183_v21 = vld [vmem:[#allocation2 + $0x470] sm:$0xff]  ;;  %v1018_v5 = vpack.c.bf16 %v178_v60, %v175_v59 }
  0x47   :  { %883 = vmatpush1.bf16.msra.mxu0 %v882_v23  ;;  %v79_v23 = vld [vmem:[#allocation2 + $0x130] sm:$0xff]  ;;  %985 = vmatprep.subr.bf16.mxu1 %v984_v22 }
  0x48   :  { %885 = vmatprep.subr.bf16.mxu0 %v884_v29  ;;  %v904_v29 = vpack.c.bf16 %v153_v20, %v150_v19  ;;  %v986_v35 = vpack.c.bf16 %v82_v24, %v79_v23  ;;  %v173_v19 = vld [vmem:[#allocation2 + $0x420] sm:$0xff]  ;;  %v176_v20 = vld [vmem:[#allocation2 + $0x438] sm:$0xff] }
  0x49   :  { %v157_v23 = vld [vmem:[#allocation2 + $0x3a0] sm:$0xff]  ;;  %v160_v24 = vld [vmem:[#allocation2 + $0x3b8] sm:$0xff] }
  0x4a   :  { %987 = vmatpush3.bf16.msra.mxu1 %v986_v35  ;;  %v1006_v34 = vpack.c.bf16 %v160_v24, %v157_v23  ;;  %v163_v35 = vld [vmem:[#allocation2 + $0x3d0] sm:$0xff] }
  0x4b   :  { %887 = vmatpush1.bf16.msra.mxu0 %v886_v39  ;;  %v906_v39 = vpack.c.bf16 %v152_v31, %v149_v30  ;;  %989 = vmatprep.subr.bf16.mxu1 %v988_v36  ;;  %v179_v30 = vld [vmem:[#allocation2 + $0x450] sm:$0xff]  ;;  %v182_v31 = vld [vmem:[#allocation2 + $0x468] sm:$0xff] }
  0x4c   :  { %889 = vmatprep.subr.bf16.mxu0 %v888_v42  ;;  %v190_v42 = vld [vmem:[#allocation2 + $0x4a8] sm:$0xff]  ;;  %v926_v37 = vpack.c.bf16 %v182_v31, %v179_v30  ;;  %v31_v23 = vld [vmem:[%s1206_s0 + $0x10] sm:$0xff]  ;;  %v225_v30 = vld [vmem:[#allocation2 + $0x5c0] sm:$0xff] }
  0x4d   :  { %v992_v50 = vpack.c.bf16 %v190_v42, %v187_v41  ;;  %v166_v36 = vld [vmem:[#allocation2 + $0x3e8] sm:$0xff]  ;;  %v185_v42 = vld [vmem:[#allocation2 + $0x480] sm:$0xff] }
  0x4e   :  { %991 = vmatpush3.bf16.msra.mxu1 %v990_v49  ;;  %v1010_v45 = vpack.c.bf16 %v166_v36, %v163_v35  ;;  %v228_v35 = vld [vmem:[#allocation2 + $0x5d8] sm:$0xff]  ;;  %v231_v36 = vld [vmem:[#allocation2 + $0x5f0] sm:$0xff] }
  0x4f   :  { %891 = vmatpush1.bf16.msra.mxu0 %v890_v51  ;;  %v139_v51 = vld [vmem:[#allocation2 + $0x310] sm:$0xff]  ;;  %993 = vmatprep.subr.bf16.mxu1 %v992_v50 }
  0x50   :  { %893 = vmatprep.subr.bf16.mxu0 %v892_v54  ;;  %v193_v54 = vld [vmem:[#allocation2 + $0x4c0] sm:$0xff]  ;;  %v994_v61 = vpack.c.bf16 %v142_v52, %v139_v51  ;;  %v223_v50 = vld [vmem:[#allocation2 + $0x5b0] sm:$0xff]  ;;  %v226_v51 = vld [vmem:[#allocation2 + $0x5c8] sm:$0xff] }
  0x51   :  { %v996_v62 = vpack.c.bf16 %v196_v55, %v193_v54  ;;  %473 = vmatmul.mubr.f32.vlgmr.msra.gmra.mrb[0].mxu1 %v1132_v11  ;;  %v194_v54 = vld [vmem:[#allocation2 + $0x4c8] sm:$0xff]  ;;  %v1016_v58 = vpack.c.bf16 %v226_v51, %v223_v50 }
  0x52   :  { %995 = vmatpush3.bf16.msra.mxu1 %v994_v61  ;;  %476 = vmatprep.mubr.f32.mxu1 %v1137_v18  ;;  %v198_v55 = vld [vmem:[#allocation2 + $0x4e8] sm:$0xff] }
  0x53   :  { %895 = vmatpush1.bf16.msra.mxu0 %v894_v63  ;;  %v145_v63 = vld [vmem:[#allocation2 + $0x340] sm:$0xff]  ;;  %997 = vmatprep.subr.bf16.mxu1 %v996_v62 }
  0x54   :  { %897 = vmatprep.subr.bf16.mxu0 %v896_v2  ;;  %v199_v2 = vld [vmem:[#allocation2 + $0x4f0] sm:$0xff]  ;;  %v998_v9 = vpack.c.bf16 %v148_v0, %v145_v63  ;;  %v229_v62 = vld [vmem:[#allocation2 + $0x5e0] sm:$0xff]  ;;  %v232_v63 = vld [vmem:[#allocation2 + $0x5f8] sm:$0xff] }
  0x55   :  { %v1000_v10 = vpack.c.bf16 %v202_v3, %v199_v2  ;;  %477 = vmatmul.mubr.f32.gmra.mrb[2].mxu1 %v1144_v26  ;;  %v200_v2 = vld [vmem:[#allocation2 + $0x4f8] sm:$0xff]  ;;  %v1020_v6 = vpack.c.bf16 %v232_v63, %v229_v62 }
  0x56   :  { %315 = vmatmul.mubr.f32.vlgmr.msra.gmra.mrb[0].mxu0 %v1132_v11  ;;  %v180_v11 = vld [vmem:[#allocation2 + $0x458] sm:$0xff]  ;;  %999 = vmatpush3.bf16.msra.mxu1 %v998_v9 }
  0x57   :  { %899 = vmatpush1.bf16.msra.mxu0 %v898_v12  ;;  %319 = vmatprep.mubr.f32.mxu0 %v1137_v18  ;;  %v151_v12 = vld [vmem:[#allocation2 + $0x370] sm:$0xff]  ;;  %v204_v3 = vld [vmem:[#allocation2 + $0x518] sm:$0xff] }
  0x58   :  { %901 = vmatprep.subr.bf16.mxu0 %v900_v15  ;;  %v205_v15 = vld [vmem:[#allocation2 + $0x520] sm:$0xff]  ;;  %v1002_v22 = vpack.c.bf16 %v154_v13, %v151_v12  ;;  %480 = vmatprep.mubr.f32.mxu1 %v1149_v32  ;;  %v203_v12 = vld [vmem:[#allocation2 + $0x510] sm:$0xff]  ;;  %v206_v13 = vld [vmem:[#allocation2 + $0x528] sm:$0xff] }
  0x59   :  { %1001 = vmatprep.subr.bf16.mxu1 %v1000_v10  ;;  %v1004_v18 = vpack.c.bf16 %v208_v16, %v205_v15  ;;  %481 = vmatmul.mubr.f32.gmra.mrb[4].mxu1 %v1156_v40  ;;  %v213_v15 = vld [vmem:[#allocation2 + $0x560] sm:$0xff]  ;;  %v1022_v16 = vpack.c.bf16 %v184_v8, %v181_v7 }
  0x5a   :  { %320 = vmatmul.mubr.f32.gmra.mrb[2].mxu0 %v1144_v26  ;;  %v186_v26 = vld [vmem:[#allocation2 + $0x488] sm:$0xff]  ;;  %1003 = vmatpush3.bf16.msra.mxu1 %v1002_v22  ;;  %v219_v22 = vld [vmem:[#allocation2 + $0x590] sm:$0xff] }
  0x5b   :  { %903 = vmatpush1.bf16.msra.mxu0 %v902_v25  ;;  %324 = vmatprep.mubr.f32.mxu0 %v1149_v32  ;;  %v922_v25 = vpack.c.bf16 %v176_v20, %v173_v19  ;;  %v1008_v32 = vpack.c.bf16 %v214_v28, %v211_v27  ;;  %v928_v41 = vpack.c.bf16 %v189_v33, %v186_v26  ;;  %v209_v20 = vld [vmem:[#allocation2 + $0x540] sm:$0xff]  ;;  %v218_v27 = vld [vmem:[#allocation2 + $0x588] sm:$0xff]  ;;  %v36_v28 = vld [vmem:[%s1206_s0 + $0x38] sm:$0xff] }
  0x5c   :  { %905 = vmatprep.subr.bf16.mxu0 %v904_v29  ;;  %v924_v29 = vpack.c.bf16 %v183_v21, %v180_v11  ;;  %550 = vmatprep.mubr.f32.mxu1 %v1161_v46  ;;  %v212_v11 = vld [vmem:[#allocation2 + $0x558] sm:$0xff]  ;;  %v35_v26 = vld [vmem:[%s1206_s0 + $0x30] sm:$0xff] }
  0x5d   :  { %1005 = vmatprep.subr.bf16.mxu1 %v1004_v18  ;;  %v216_v21 = vld [vmem:[#allocation2 + $0x578] sm:$0xff]  ;;  %v946_v18 = vpack.c.bf16 %v212_v11, %v209_v20 }
  0x5e   :  { %325 = vmatmul.mubr.f32.gmra.mrb[4].mxu0 %v1156_v40  ;;  %v195_v40 = vld [vmem:[#allocation2 + $0x4d0] sm:$0xff]  ;;  %1007 = vmatpush3.bf16.msra.mxu1 %v1006_v34  ;;  %v948_v24 = vpack.c.bf16 %v219_v22, %v216_v21  ;;  %v221_v34 = vld [vmem:[#allocation2 + $0x5a0] sm:$0xff] }
  0x5f   :  { %907 = vmatpush1.bf16.msra.mxu0 %v906_v39  ;;  %393 = vmatprep.mubr.f32.mxu0 %v1161_v46  ;;  %v220_v39 = vld [vmem:[#allocation2 + $0x598] sm:$0xff]  ;;  %v932_v52 = vpack.c.bf16 %v195_v40, %v192_v44  ;;  %v39_v44 = vld [vmem:[%s1206_s0 + $0x50] sm:$0xff]  ;;  %v235_v40 = vlaneseq }
  0x60   :  { %909 = vmatprep.subr.bf16.mxu0 %v908_v43  ;;  %v188_v43 = vld [vmem:[#allocation2 + $0x498] sm:$0xff]  ;;  %1009 = vmatprep.subr.bf16.mxu1 %v1008_v32  ;;  %v1012_v47 = vpack.c.bf16 %v220_v39, %v217_v38  ;;  %v956_v38 = vpack.c.bf16 %v231_v36, %v228_v35  ;;  %v227_v39 = vld [vmem:[#allocation2 + $0x5d0] sm:$0xff] }
  0x61   :  { %v172_v46 = vld [vmem:[#allocation2 + $0x418] sm:$0xff]  ;;  %v930_v49 = vpack.c.bf16 %v188_v43, %v185_v42 }
  0x62   :  { %1011 = vmatpush3.bf16.msra.mxu1 %v1010_v45  ;;  %v1014_v57 = vpack.c.bf16 %v172_v46, %v169_v48  ;;  %v224_v32 = vld [vmem:[#allocation2 + $0x5b8] sm:$0xff]  ;;  %v1091_v45 = vmov 0.0   ;;  %v233_v46 = vld [vmem:[%s1208_s2] sm:$0x7] }
  0x63   :  { %911 = vmatpush1.bf16.msra.mxu0 %v910_v53  ;;  %v191_v53 = vld [vmem:[#allocation2 + $0x4b0] sm:$0xff]  ;;  %1013 = vmatprep.subr.bf16.mxu1 %v1012_v47  ;;  %v40_v43 = vld [vmem:[%s1206_s0 + $0x58] sm:$0xff]  ;;  %v236_v47 = vshrl.u32 %v235_v40, 7  ;;  %s1093_s0 = smov [#allocation5]  }
  0x64   :  { %913 = vmatprep.subr.bf16.mxu0 %v912_v56  ;;  %v201_v56 = vld [vmem:[#allocation2 + $0x500] sm:$0xff]  ;;  %v934_v61 = vpack.c.bf16 %v194_v54, %v191_v53  ;;  %s726_s2 = sshll.u32 %s1093_s0, 4  ;;  %s727_s2 = int_to_ptr.vmem [resolvable:$true] %s726_s2 }
  0x65   :  { %v936_v0 = vpack.c.bf16 %v201_v56, %v198_v55  ;;  %v245_v48 = vsub.s32 2, %v236_v47  ;;  %s1062_s24 = scalar_lea.vmem %s727_s2, 128  ;;  %p1067_p9 = scmp.lt.s32.totalorder %s727_s2, %s727_s2 }
  0x66   :  { %1015 = vmatpush3.bf16.msra.mxu1 %v1014_v57  ;;  %p1063_p8 = scmp.ne.s32.totalorder %s727_s2, %s1062_s24  ;;  %p1068_p10 = scmp.lt.s32.totalorder %s1062_s24, %s1062_s24 }
  0x67   :  { %915 = vmatpush1.bf16.msra.mxu0 %v914_v1  ;;  %v197_v1 = vld [vmem:[#allocation2 + $0x4e0] sm:$0xff]  ;;  %1017 = vmatprep.subr.bf16.mxu1 %v1016_v58 }
  0x68   :  { %917 = vmatprep.subr.bf16.mxu0 %v916_v4  ;;  %v207_v4 = vld [vmem:[#allocation2 + $0x530] sm:$0xff]  ;;  %v938_v9 = vpack.c.bf16 %v200_v2, %v197_v1  ;;  %v237_v2 = vsub.s32 0, %v236_v47  ;;  %p1069_p11 = por %p1068_p10, %p1067_p9 }
  0x69   :  { %v940_v10 = vpack.c.bf16 %v207_v4, %v204_v3 }
  0x6a   :  { %1019 = vmatpush3.bf16.msra.mxu1 %v1018_v5  ;;  %p1070_p12 = pnand %p1069_p11, %p1063_p8 }
  0x6b   :  { %919 = vmatpush1.bf16.msra.mxu0 %v918_v14  ;;  %v210_v14 = vld [vmem:[#allocation2 + $0x548] sm:$0xff]  ;;  %1021 = vmatprep.subr.bf16.mxu1 %v1020_v6  ;;  %v238_v6 = vrot.slane %v233_v46, %v237_v2 }
  0x6c   :  { %921 = vmatprep.subr.bf16.mxu0 %v920_v17  ;;  %v942_v17 = vpack.c.bf16 %v206_v13, %v203_v12  ;;  %v944_v19 = vpack.c.bf16 %v213_v15, %v210_v14 }
  0x6e   :  { %1023 = vmatpush3.bf16.msra.mxu1 %v1022_v16 }
  0x6f   :  { %923 = vmatpush1.bf16.msra.mxu0 %v922_v25  ;;  %v215_v25 = vld [vmem:[#allocation2 + $0x570] sm:$0xff]  ;;  %822 = vmatprep.subr.mxu1 %v1091_v45 }
  0x70   :  { %925 = vmatprep.subr.bf16.mxu0 %v924_v29  ;;  %v222_v29 = vld [vmem:[#allocation2 + $0x5a8] sm:$0xff]  ;;  %v950_v31 = vpack.c.bf16 %v218_v27, %v215_v25 }
  0x71   :  { %551 = vmatmul.mubr.f32.vlgmr.msra.gmra.mrb[6].mxu1 %v31_v23  ;;  %v952_v33 = vpack.c.bf16 %v225_v30, %v222_v29 }
  0x72   :  { %554 = vmatprep.mubr.f32.mxu1 %v36_v28 }
  0x73   :  { %927 = vmatpush1.bf16.msra.mxu0 %v926_v37  ;;  %v954_v37 = vpack.c.bf16 %v224_v32, %v221_v34 }
  0x74   :  { %929 = vmatprep.subr.bf16.mxu0 %v928_v41  ;;  %v230_v41 = vld [vmem:[#allocation2 + $0x5e8] sm:$0xff] }
  0x75   :  { %555 = vmatmul.mubr.f32.gmra.mrb[8].mxu1 %v35_v26  ;;  %v958_v42 = vpack.c.bf16 %v230_v41, %v227_v39 }
  0x76   :  { %558 = vmatprep.mubr.f32.mxu1 %v40_v43 }
  0x77   :  { %931 = vmatpush1.bf16.msra.mxu0 %v930_v49  ;;  %v246_v49 = vrot.slane %v233_v46, %v245_v48 }
  0x78   :  { %933 = vmatprep.subr.bf16.mxu0 %v932_v52 }
  0x79   :  { %559 = vmatmul.mubr.f32.gmra.mrb[10].mxu1 %v39_v44 }
  0x7a   :  { %824 = vmatprep.mubr.msk.f32.mxu1 %vm1092_vm0, %v1091_v45 }
  0x7b   :  { %935 = vmatpush1.bf16.msra.mxu0 %v934_v61 }
  0x7c   :  { %937 = vmatprep.subr.bf16.mxu0 %v936_v0  ;;  %v241_v0 = vsub.s32 1, %v236_v47 }
  0x7e   :  { %v242_v4 = vrot.slane %v233_v46, %v241_v0 }
  0x7f   :  { %939 = vmatpush1.bf16.msra.mxu0 %v938_v9 }
  0x80   :  { %941 = vmatprep.subr.bf16.mxu0 %v940_v10 }
  0x83   :  { %943 = vmatpush1.bf16.msra.mxu0 %v942_v17 }
  0x84   :  { %945 = vmatprep.subr.bf16.mxu0 %v944_v19 }
  0x87   :  { %947 = vmatpush1.bf16.msra.mxu0 %v946_v18 }
  0x88   :  { %949 = vmatprep.subr.bf16.mxu0 %v948_v24 }
  0x8b   :  { %951 = vmatpush1.bf16.msra.mxu0 %v950_v31 }
  0x8c   :  { %953 = vmatprep.subr.bf16.mxu0 %v952_v33 }
  0x8f   :  { %955 = vmatpush1.bf16.msra.mxu0 %v954_v37 }
  0x90   :  { %957 = vmatprep.subr.bf16.mxu0 %v956_v38 }
  0x93   :  { %959 = vmatpush1.bf16.msra.mxu0 %v958_v42 }
  0x96   :  { %394 = vmatmul.mubr.f32.vlgmr.msra.gmra.mrb[0].mxu0 %v31_v23 }
  0x97   :  { %398 = vmatprep.mubr.f32.mxu0 %v36_v28 }
  0x9a   :  { %399 = vmatmul.mubr.f32.gmra.mrb[2].mxu0 %v35_v26 }
  0x9b   :  { %403 = vmatprep.mubr.f32.mxu0 %v40_v43 }
  0x9e   :  { %404 = vmatmul.mubr.f32.gmra.mrb[6].mxu0 %v39_v44 }
 0x124   :  { %v768_v52 = vpop.f32.mrb[0].mxu1 }
 0x125   :  { %v769_v53 = vpop.f32.mrb[1].mxu1 }
 0x128   :  { %v771_v54 = vpop.f32.mrb[2].mxu1 }
 0x129   :  { %v772_v55 = vpop.f32.mrb[3].mxu1 }
 0x12c   :  { %v774_v56 = vpop.f32.mrb[4].mxu1 }
 0x12d   :  { %v775_v57 = vpop.f32.mrb[5].mxu1 }
 0x12e   :  { %v776_v58 = vadd.f32 %v775_v57, %v774_v56 }
 0x130   :  { %v483_v59 = vadd.f32 %v776_v58, %v246_v49 }
 0x131   :  { %v326_v50 = vpop.f32.mrb[4].mxu0 }
 0x132   :  { %v327_v51 = vpop.f32.mrb[5].mxu0 }
 0x144   :  { %v809_v60 = vpop.f32.mrb[6].mxu1 }
 0x145   :  { %v810_v61 = vpop.f32.mrb[7].mxu1 }
 0x148   :  { %v812_v62 = vpop.f32.mrb[8].mxu1 }
 0x149   :  { %v813_v63 = vpop.f32.mrb[9].mxu1 }
 0x14c   :  { %v815_v10 = vpop.f32.mrb[10].mxu1 }
 0x14d   :  { %v816_v13 = vpop.f32.mrb[11].mxu1 }
 0x14e   :  { %v817_v15 = vadd.f32 %v816_v13, %v815_v10 }
 0x150   :  { %v561_v16 = vadd.f32 %v817_v15, %v483_v59 }
 0x169   :  { %v395_v1 = vpop.f32.mrb[0].mxu0 }
 0x16a   :  { %v397_v3 = vpop.f32.mrb[1].mxu0  ;;  %v1024_v9 = vadd.f32 %v395_v1, %v238_v6 }
 0x16d   :  { %v400_v5 = vpop.f32.mrb[2].mxu0 }
 0x16e   :  { %v401_v7 = vpop.f32.mrb[3].mxu0 }
 0x16f   :  { %v1025_v8 = vadd.f32 %v401_v7, %v242_v4 }
 0x171   :  { %823 = vmatpush3.xpose.msra.mxu1 %v1025_v8  ;;  %v405_v12 = vpop.f32.mrb[6].mxu0 }
 0x172   :  { %827 = vmatprep.subr.mxu1 %v1091_v45  ;;  %v406_v14 = vpop.f32.mrb[7].mxu0 }
 0x174   :  { %825 = vmatmul.mubr.f32.vlgmr.msra.gmra.mrb[12].mxu1 %v1024_v9 }
 0x175   :  { %829 = vmatprep.mubr.msk.f32.mxu1 %vm1092_vm0, %v1091_v45  ;;  %828 = vmatpush3.msra.mxu1 %v561_v16 }
 0x247   :  { %v630_v17 = vpop.f32.mrb[12].mxu1 }
 0x248   :  { %v826_v19 = vpop.f32.mrb[13].mxu1  ;;  %v635_v20 = vsel %vm634_vm1, %v630_v17, -inf }
 0x249   :  { %636 = vmax.xlane.f32.xlu0 %v635_v20 }
 0x2d6   :  { %v637_v11 = vpop.xlane.xlu0 %636 }
 0x2d7   :  { %v638_v21 = vsub.f32 %v630_v17, %v637_v11 }
 0x2d9   :  { %v639_v22 = vmul.f32 1.442695, %v638_v21 }
 0x2db   :  { %1036 = vpow2.f32 %v639_v22 }
 0x2e5   :  { %v1037_v18 = vpop.eup %1036 }
 0x2e6   :  { %v641_v23 = vsel %vm634_vm1, %v1037_v18, 0.0 }
 0x2e7   :  { %642 = vadd.xlane.f32.xlu0 %v641_v23 }
 0x374   :  { %v643_v24 = vpop.xlane.xlu0 %642 }
 0x375   :  { %1038 = vrcp.f32 %v643_v24 }
 0x37f   :  { %v1039_v25 = vpop.eup %1038 }
 0x380   :  { %v645_v27 = vmul.f32 %v1039_v25, %v1037_v18 }
 0x382   :  { %830 = vmatmul.mubr.msk.f32.vlgmr.msra.gmra.mrb[14].mxu1 %vm634_vm1, %v645_v27 }
 0x455   :  { %v715_v28 = vpop.f32.mrb[14].mxu1 }
 0x456   :  { %719 = vst [vmem:[#allocation5] sm:$0xff] %v715_v28  ;;  %v831_v29 = vpop.f32.mrb[15].mxu1 }
 0x457   :  { %1073 = shalt.err (!%p1070_p12)
}
 0x458   :  { %s1074_s26 = scalar_lea.hbm %s1209_s3, 128 }
 0x459   :  { %p1075_p13 = scmp.ne.s32.totalorder %s1209_s3, %s1074_s26  ;;  %p1078_p0 = scmp.lt.u32.totalorder %s1074_s26, %s1209_s3 }
 0x45b   :  { %p1080_p1 = pnand %p1078_p0, %p1075_p13 }
 0x45d   :  { %1083 = shalt.err (!%p1080_p1)
}
 0x45e   :  { %729 = dma.vmem_to_hbm [thread:$0]  %s727_s2, 128, %s1209_s3, [#allocation4]  }
 0x45f   :  { %1086 = dma.done.wait [#allocation4], 128  }
 0x460   :  { %1087 = vsyncadd [#allocation4], 4294967168 }
 0x461   :  { %733 = vsyncpa [#allocation3], 1 }
 0x462   :  { %734 = vsyncpa [#allocation4], 1 }

</bundles_post_ra>
